<compile_context>
chip_gen: v6e
topology: v6e:2x2x1
jax: 0.10.0
libtpu: 0.0.40
codegen_flags: <defaults>
</compile_context>

<pallas_src>
import jax
import jax.numpy as jnp
from jax.experimental import pallas as pl
from jax.experimental.pallas import tpu as pltpu


def _h_sigmoid_kernel(x_ref, o_ref):
    # relu6(x + 3) / 6 computed in f32, cast on store. 4 VPU ops + 1 divide,
    # all hidden behind HBM streaming for this memory-bound kernel.
    x = x_ref[...].astype(jnp.float32)
    y = jnp.minimum(jnp.maximum(x + 3.0, 0.0), 6.0) / 6.0
    o_ref[...] = y.astype(o_ref.dtype)


def _h_sigmoid_jnp(x):
    # Pure-jnp path for tiny tails / tiny arrays (matches the kernel exactly).
    xf = x.astype(jnp.float32)
    return (jnp.clip(xf + 3.0, 0.0, 6.0) / 6.0).astype(x.dtype)


def _default_block_bytes():
    # v6e/v7x: 4 MiB blocks (in+out double-buffered = 16 MiB << 32 MiB scoped
    # VMEM default). v5e (16 MiB scoped default) and older: stay at 2 MiB.
    try:
        kind = jax.devices()[0].device_kind.lower()
    except Exception:
        return 2 << 20
    if "v6" in kind or "v7" in kind:
        return 4 << 20
    return 2 << 20


def _run_tiles(x2d, *, block_bytes, alias):
    """Run the elementwise kernel over a (rows, W) view, W a multiple of 128."""
    rows, W = x2d.shape
    dt = x2d.dtype
    itemsize = jnp.dtype(dt).itemsize
    packing = max(1, 4 // itemsize)       # f32 -> 1, bf16 -> 2, int8/fp8 -> 4
    sub = 8 * packing                     # sublane granularity for this dtype

    rows_rounded = pl.cdiv(rows, sub) * sub
    # Row-block sized for ~block_bytes, multiple of the sublane granularity.
    br = max(sub, (block_bytes // (W * itemsize)) // sub * sub)
    br = min(br, rows_rounded)
    # Guarantee >=2 blocks when there is enough work: lets v7x's two
    # TensorCores both take row-blocks and overlaps in/out DMA across blocks.
    if rows_rounded >= 2 * sub:
        br = min(br, max(sub, (rows_rounded // 2) // sub * sub))

    grid = (pl.cdiv(rows, br),)           # partial last block is fine
    return pl.pallas_call(
        _h_sigmoid_kernel,
        out_shape=jax.ShapeDtypeStruct((rows, W), dt),
        grid_spec=pltpu.PrefetchScalarGridSpec(
            num_scalar_prefetch=0,
            grid=grid,
            in_specs=[pl.BlockSpec((br, W), lambda i: (i, 0))],
            out_specs=pl.BlockSpec((br, W), lambda i: (i, 0)),
        ),
        compiler_params=pltpu.CompilerParams(
            dimension_semantics=("parallel",),
        ),
        input_output_aliases={0: 0} if alias else {},
    )(x2d)


def h_sigmoid(x, *, max_lanes=1024, block_bytes=None, donate_input=False):
    """Hard-sigmoid matching torch: relu6(x + 3) / 6.

    Accepts any shape. Non-floating inputs are promoted to float32 (matching
    torch's true division). With donate_input=True the caller's buffer may be
    aliased to the output on the zero-copy path -- do not reuse `x` afterwards.
    """
    # TODO(synk): when possible, fuse this epilogue into the producing
    # matmul/conv kernel instead of paying a standalone read+write pass.
    orig_shape = x.shape
    if not jnp.issubdtype(x.dtype, jnp.floating):
        x = x.astype(jnp.float32)
    dt = x.dtype
    n = x.size

    if block_bytes is None:
        block_bytes = _default_block_bytes()

    itemsize = jnp.dtype(dt).itemsize
    packing = max(1, 4 // itemsize)
    sub = 8 * packing

    # Too small for even one 128-lane row: not worth a kernel launch.
    if n < 128:
        return _h_sigmoid_jnp(x).reshape(orig_shape)

    if n % 128 == 0:
        # Fast path: reshape-only 2-D view, partial last row-block.
        # W = widest multiple-of-128 divisor of n (prefer one that also gives
        # at least a full sublane group of rows, so stores stay unmasked).
        cands = [c for c in range(max_lanes, 127, -128) if n % c == 0]
        W = next((c for c in cands if n // c >= sub), cands[0] if cands else 128)
        rows = n // W
        x2d = x.reshape(rows, W)
        out2d = _run_tiles(x2d, block_bytes=block_bytes, alias=donate_input)
        return out2d.reshape(orig_shape)

    # Unaligned path: kernel on the 128-aligned prefix, tiny (<128 element)
    # tail in plain jnp. The prefix slice is a kernel-private temporary, so it
    # is always aliased to the output (no second full-size HBM buffer).
    W = 128
    bulk_n = (n // W) * W
    x_flat = x.reshape(-1)
    bulk2d = x_flat[:bulk_n].reshape(bulk_n // W, W)
    bulk_out = _run_tiles(bulk2d, block_bytes=block_bytes, alias=True)
    tail_out = _h_sigmoid_jnp(x_flat[bulk_n:])
    return jnp.concatenate([bulk_out.reshape(-1), tail_out]).reshape(orig_shape)


if __name__ == "__main__":
    key = jax.random.PRNGKey(0)

    # NCHW activation, the typical place h_sigmoid sits after a conv.
    x = jax.random.normal(key, (2, 4, 16, 16), dtype=jnp.float32) * 4.0
    y = h_sigmoid(x)
    jax.block_until_ready(y)
    assert y.shape == x.shape and y.dtype == x.dtype
    assert jnp.allclose(y, _h_sigmoid_jnp(x), atol=1e-6, rtol=1e-6), \
        "f32 mismatch vs reference"

    # Non-128-aligned size exercises the bulk + tail path.
    x_odd = jax.random.normal(jax.random.PRNGKey(1), (3, 5, 7, 9),
                              dtype=jnp.float32) * 4.0
    y_odd = h_sigmoid(x_odd)
    jax.block_until_ready(y_odd)
    assert y_odd.shape == x_odd.shape and y_odd.dtype == x_odd.dtype
    assert jnp.allclose(y_odd, _h_sigmoid_jnp(x_odd), atol=1e-6, rtol=1e-6), \
        "bulk+tail path mismatch vs reference"

    # bf16 exercises the packed-sublane (16-row) granularity.
    x_bf16 = (jax.random.normal(jax.random.PRNGKey(2), (2, 4, 16, 16),
                                dtype=jnp.float32) * 4.0).astype(jnp.bfloat16)
    y_bf16 = h_sigmoid(x_bf16)
    jax.block_until_ready(y_bf16)
    assert y_bf16.dtype == jnp.bfloat16
    assert jnp.allclose(y_bf16.astype(jnp.float32),
                        jnp.clip(x_bf16.astype(jnp.float32) + 3.0, 0.0, 6.0) / 6.0,
                        atol=2e-2, rtol=2e-2), "bf16 mismatch vs reference"

    print("KERNEL_OK")
</pallas_src>

<mosaic_0001>
module attributes {stable_mosaic.version = 11 : i64} {
  func.func @_h_sigmoid_kernel(%arg0: i32, %arg1: memref<8x256xf32, #tpu.memory_space<vmem>>, %arg2: memref<8x256xf32, #tpu.memory_space<vmem>>) attributes {dimension_semantics = [#tpu.dimension_semantics<parallel>], iteration_bounds = array<i64: 1>, scalar_prefetch = 0 : i64, scratch_operands = 0 : i64, tpu.core_type = #tpu.core_type<tc>, window_params = [{transform_indices = @transform_0, window_bounds = array<i64: 8, 256>}, {transform_indices = @transform_1, window_bounds = array<i64: 8, 256>}]} {
    %c0 = arith.constant 0 : index
    %c0_0 = arith.constant 0 : index
    %0 = vector.load %arg1[%c0, %c0_0] : memref<8x256xf32, #tpu.memory_space<vmem>>, vector<8x256xf32>
    %cst = arith.constant 3.000000e+00 : f32
    %1 = vector.broadcast %cst : f32 to vector<8x256xf32>
    %2 = arith.addf %0, %1 : vector<8x256xf32>
    %cst_1 = arith.constant 0.000000e+00 : f32
    %3 = vector.broadcast %cst_1 : f32 to vector<8x256xf32>
    %4 = arith.maximumf %2, %3 : vector<8x256xf32>
    %cst_2 = arith.constant 6.000000e+00 : f32
    %5 = vector.broadcast %cst_2 : f32 to vector<8x256xf32>
    %6 = arith.minimumf %4, %5 : vector<8x256xf32>
    %cst_3 = arith.constant 6.000000e+00 : f32
    %7 = vector.broadcast %cst_3 : f32 to vector<8x256xf32>
    %8 = arith.divf %6, %7 : vector<8x256xf32>
    %c0_4 = arith.constant 0 : index
    %c0_5 = arith.constant 0 : index
    %9 = vector.load %arg2[%c0_4, %c0_5] : memref<8x256xf32, #tpu.memory_space<vmem>>, vector<8x256xf32>
    tpu.vector_store %arg2[%c0_4, %c0_5], %8 {strides = array<i32>} : memref<8x256xf32, #tpu.memory_space<vmem>>, vector<8x256xf32>,
    return
  }
  func.func @transform_0(%arg0: i32) -> (i32, i32) {
    %c0_i32 = arith.constant 0 : i32
    %c0_i32_0 = arith.constant 0 : i32
    return %arg0, %c0_i32 : i32, i32
  }
  func.func @transform_1(%arg0: i32) -> (i32, i32) {
    %c0_i32 = arith.constant 0 : i32
    %c0_i32_0 = arith.constant 0 : i32
    return %arg0, %c0_i32 : i32, i32
  }
}

</mosaic_0001>

<bundles_post_ra>
// kernel: tpu_custom_call.1
= control target key start
LH: loop header
LB: loop body
LE: loop exit
PB: predicated region body
PF: predicated region fallthrough
CT: control target
= control target key end

     0   :  { %6 = vsyncpa [#allocation3], 0  ;;  %s113_s0 = inlined_call_operand.hbm [shape: f32[8,256], index: 0, kind: input, shape index: {}]   ;;  %s114_s1 = inlined_call_operand.hbm [shape: f32[8,256], index: 1, kind: output, shape index: {}]  }
   0x1   :  { %7 = vsyncpa [#allocation4], 0  ;;  %s95_s6 = smov [#allocation2]  }
   0x2   :  { %s14_s7 = sshll.u32 %s95_s6, 4  ;;  %s15_s7 = int_to_ptr.vmem [resolvable:$true] %s14_s7 }
   0x3   :  { %s59_s8 = scalar_lea.vmem %s15_s7, 256  ;;  %p64_p1 = scmp.lt.s32.totalorder %s15_s7, %s15_s7 }
   0x4   :  { %p60_p0 = scmp.ne.s32.totalorder %s15_s7, %s59_s8  ;;  %p65_p2 = scmp.lt.s32.totalorder %s59_s8, %s59_s8 }
   0x6   :  { %p66_p3 = por %p65_p2, %p64_p1 }
   0x8   :  { %p67_p4 = pnand %p66_p3, %p60_p0 }
   0xa   :  { %70 = shalt.err (!%p67_p4)
}
   0xb   :  { %17 = dma.hbm_to_vmem [thread:$0]  %s113_s0, 256, %s15_s7, [#allocation3]  }
   0xc   :  { %91 = dma.done.wait [#allocation3], 256  }
   0xd   :  { %92 = vsyncadd [#allocation3], 4294967040  ;;  %v21_v0 = vld [vmem:[#allocation2] sm:$0xff]  ;;  %v22_v1 = vld [vmem:[#allocation2 + $0x8] sm:$0xff]  ;;  %s96_s11 = smov [#allocation5]  }
   0xe   :  { %v23_v2 = vadd.f32 3.0, %v21_v0  ;;  %v24_v3 = vadd.f32 3.0, %v22_v1  ;;  %s40_s12 = sshll.u32 %s96_s11, 4  ;;  %s41_s12 = int_to_ptr.vmem [resolvable:$true] %s40_s12 }
   0xf   :  { %s71_s13 = scalar_lea.vmem %s41_s12, 256  ;;  %p76_p6 = scmp.lt.s32.totalorder %s41_s12, %s41_s12 }
  0x10   :  { %v25_v4 = vmax.f32 %v23_v2, 0.0  ;;  %v26_v5 = vmax.f32 %v24_v3, 0.0  ;;  %p72_p5 = scmp.ne.s32.totalorder %s41_s12, %s71_s13  ;;  %p77_p7 = scmp.lt.s32.totalorder %s71_s13, %s71_s13 }
  0x12   :  { %v27_v6 = vmin.f32 %v25_v4, 6.0  ;;  %v28_v7 = vmin.f32 %v26_v5, 6.0  ;;  %p78_p8 = por %p77_p7, %p76_p6 }
  0x14   :  { %v30_v8 = vmul.f32 0.16666667, %v27_v6  ;;  %v31_v9 = vmul.f32 0.16666667, %v28_v7  ;;  %p79_p9 = pnand %p78_p8, %p72_p5 }
  0x16   :  { %32 = vst [vmem:[#allocation5] sm:$0xff] %v30_v8  ;;  %33 = vst [vmem:[#allocation5 + $0x8] sm:$0xff] %v31_v9 }
  0x17   :  { %82 = shalt.err (!%p79_p9)
}
  0x18   :  { %43 = dma.vmem_to_hbm [thread:$0]  %s41_s12, 256, %s114_s1, [#allocation4]  }
  0x19   :  { %93 = dma.done.wait [#allocation4], 256  }
  0x1a   :  { %94 = vsyncadd [#allocation4], 4294967040 }
  0x1b   :  { %47 = vsyncpa [#allocation3], 1 }
  0x1c   :  { %48 = vsyncpa [#allocation4], 1 }

</bundles_post_ra>
